<compile_context>
chip_gen: v6e
topology: v6e:2x2x1
jax: 0.10.0
libtpu: 0.0.40
codegen_flags: <defaults>
</compile_context>

<pallas_src>
import functools

import jax
import jax.numpy as jnp
from jax.experimental import pallas as pl
from jax.experimental.pallas import tpu as pltpu

CHANNELS = 6
GRID_SIZE = 6
IN_DIM = GRID_SIZE * GRID_SIZE * CHANNELS  # 216
K_PAD = 256                                # 216 padded to a lane-aligned K
HIDDEN = 128
N_ACTIONS = 4
HEAD_PAD = 128                             # fused actor+critic head, lane-dense


def _round_up(n, m):
    return ((n + m - 1) // m) * m


def ppo_kernel(x_ref, w1_ref, b1_ref, w2_ref, b2_ref, wh_ref, bh_ref, out_ref):
    x = x_ref[...]                                               # (TILE_B, 256) bf16

    # shared MLP: Linear(256->128) + ReLU, Linear(128->128) + ReLU
    # (bf16 MXU operands, f32 accumulation, f32 elementwise)
    h1 = jnp.dot(x, w1_ref[...], preferred_element_type=jnp.float32) + b1_ref[...]
    h1 = jnp.maximum(h1, 0.0).astype(jnp.bfloat16)
    h2 = jnp.dot(h1, w2_ref[...], preferred_element_type=jnp.float32) + b2_ref[...]
    h2 = jnp.maximum(h2, 0.0).astype(jnp.bfloat16)

    # fused heads: cols 0..3 = actor logits, col 4 = critic value, cols 5.. = 0
    head = jnp.dot(h2, wh_ref[...], preferred_element_type=jnp.float32) + bh_ref[...]

    col = jax.lax.broadcasted_iota(jnp.int32, head.shape, 1)
    is_actor = col < N_ACTIONS

    # softmax over the 4 real actor lanes only (padding masked to -inf)
    logits = jnp.where(is_actor, head, -jnp.inf)
    m = jnp.max(logits, axis=-1, keepdims=True)
    e = jnp.where(is_actor, jnp.exp(logits - m), 0.0)
    probs = e / jnp.sum(e, axis=-1, keepdims=True)

    # cols 0..3 -> probs, col 4 -> critic value (head), rest -> 0 (head is 0 there)
    out_ref[...] = jnp.where(is_actor, probs, head)


def _prepare_params(params):
    """Pad / fuse / cast the torch-layout params for the kernel."""
    w1, b1, w2, b2, wa, ba, wc, bc = params

    # pad K 216 -> 256 with zeros (zeros contribute nothing to the dot)
    w1p = jnp.zeros((K_PAD, HIDDEN), jnp.float32).at[:IN_DIM, :].set(w1)

    # fuse actor (128,4) + critic (128,1) into one lane-dense (128,128) weight
    wh = jnp.zeros((HIDDEN, HEAD_PAD), jnp.float32)
    wh = wh.at[:, :N_ACTIONS].set(wa).at[:, N_ACTIONS:N_ACTIONS + 1].set(wc)
    bh = jnp.zeros((1, HEAD_PAD), jnp.float32)
    bh = bh.at[:, :N_ACTIONS].set(ba).at[:, N_ACTIONS:N_ACTIONS + 1].set(bc)

    return (w1p.astype(jnp.bfloat16), b1,
            w2.astype(jnp.bfloat16), b2,
            wh.astype(jnp.bfloat16), bh)


@functools.partial(jax.jit, static_argnums=())
def ppo_forward(x_nchw, params):
    """x_nchw: (B, 6, 6, 6) float32.  Returns (probs (B,4), value (B,1))."""
    B = x_nchw.shape[0]
    x_flat = x_nchw.reshape(B, -1)  # row-major flatten == torch nn.Flatten on NCHW

    # batch tile: big enough to amortize per-step overhead, (8,·)-aligned
    tile_b = 512 if B >= 512 else _round_up(B, 8)
    b_pad = _round_up(B, tile_b)

    # pad batch -> b_pad and K 216 -> 256; cast x to bf16 (halves HBM traffic)
    xp = jnp.zeros((b_pad, K_PAD), jnp.bfloat16)
    xp = xp.at[:B, :IN_DIM].set(x_flat.astype(jnp.bfloat16))

    w1p, b1, w2b, b2, wh, bh = _prepare_params(params)

    grid = (b_pad // tile_b,)
    weight_spec = lambda shape: pl.BlockSpec(shape, lambda i: (0, 0))

    out = pl.pallas_call(
        ppo_kernel,
        out_shape=jax.ShapeDtypeStruct((b_pad, HEAD_PAD), jnp.float32),
        grid=grid,
        in_specs=[
            pl.BlockSpec((tile_b, K_PAD), lambda i: (i, 0)),   # x tile
            weight_spec((K_PAD, HIDDEN)),                      # w1 (resident)
            weight_spec((1, HIDDEN)),                          # b1
            weight_spec((HIDDEN, HIDDEN)),                     # w2
            weight_spec((1, HIDDEN)),                          # b2
            weight_spec((HIDDEN, HEAD_PAD)),                   # fused head weight
            weight_spec((1, HEAD_PAD)),                        # fused head bias
        ],
        out_specs=pl.BlockSpec((tile_b, HEAD_PAD), lambda i: (i, 0)),
        compiler_params=pltpu.CompilerParams(
            dimension_semantics=("parallel",)),
    )(xp, w1p, b1, w2b, b2, wh, bh)

    probs = out[:B, :N_ACTIONS]
    value = out[:B, N_ACTIONS:N_ACTIONS + 1]
    return probs, value


def init_params(key):
    """Deterministic, torch-nn.Linear-style uniform(-1/sqrt(fan_in), +) init."""
    def linear(k, fan_in, fan_out):
        kw, kb = jax.random.split(k)
        bound = 1.0 / jnp.sqrt(fan_in)
        w = jax.random.uniform(kw, (fan_in, fan_out), jnp.float32, -bound, bound)
        b = jax.random.uniform(kb, (1, fan_out), jnp.float32, -bound, bound)
        return w, b

    k1, k2, k3, k4 = jax.random.split(key, 4)
    w1, b1 = linear(k1, IN_DIM, HIDDEN)
    w2, b2 = linear(k2, HIDDEN, HIDDEN)
    wa, ba = linear(k3, HIDDEN, N_ACTIONS)
    wc, bc = linear(k4, HIDDEN, 1)
    return (w1, b1, w2, b2, wa, ba, wc, bc)


def _reference_forward(x_nchw, params):
    """Pure-JAX f32 reference matching the PyTorch module."""
    w1, b1, w2, b2, wa, ba, wc, bc = params
    x = x_nchw.reshape(x_nchw.shape[0], -1)
    h = jnp.maximum(x @ w1 + b1, 0.0)
    h = jnp.maximum(h @ w2 + b2, 0.0)
    logits = h @ wa + ba
    probs = jax.nn.softmax(logits, axis=-1)
    value = h @ wc + bc
    return probs, value


if __name__ == "__main__":
    key = jax.random.PRNGKey(0)
    k_params, k_x = jax.random.split(key)

    params = init_params(k_params)
    B = 2
    x = jax.random.normal(k_x, (B, CHANNELS, GRID_SIZE, GRID_SIZE), jnp.float32)

    probs, value = jax.block_until_ready(ppo_forward(x, params))

    assert probs.shape == (B, N_ACTIONS)
    assert value.shape == (B, 1)
    # softmax rows must sum to 1
    assert jnp.allclose(jnp.sum(probs, axis=-1), 1.0, atol=1e-5)

    # sanity check against the f32 reference (bf16 matmul operands => loose tol)
    p_ref, v_ref = _reference_forward(x, params)
    assert jnp.allclose(probs, p_ref, atol=5e-2, rtol=5e-2)
    assert jnp.allclose(value, v_ref, atol=5e-2, rtol=5e-2)

    print("KERNEL_OK")
</pallas_src>

<mosaic_0001>
module attributes {stable_mosaic.version = 11 : i64} {
  func.func @ppo_kernel(%arg0: i32, %arg1: memref<8x256xbf16, #tpu.memory_space<vmem>>, %arg2: memref<256x128xbf16, #tpu.memory_space<vmem>>, %arg3: memref<1x128xf32, #tpu.memory_space<vmem>>, %arg4: memref<128x128xbf16, #tpu.memory_space<vmem>>, %arg5: memref<1x128xf32, #tpu.memory_space<vmem>>, %arg6: memref<128x128xbf16, #tpu.memory_space<vmem>>, %arg7: memref<1x128xf32, #tpu.memory_space<vmem>>, %arg8: memref<8x128xf32, #tpu.memory_space<vmem>>) attributes {dimension_semantics = [#tpu.dimension_semantics<parallel>], iteration_bounds = array<i64: 1>, scalar_prefetch = 0 : i64, scratch_operands = 0 : i64, tpu.core_type = #tpu.core_type<tc>, window_params = [{transform_indices = @transform_0, window_bounds = array<i64: 8, 256>}, {pipeline_mode = #tpu.pipeline_mode<synchronous>, transform_indices = @transform_1, window_bounds = array<i64: 256, 128>}, {pipeline_mode = #tpu.pipeline_mode<synchronous>, transform_indices = @transform_2, window_bounds = array<i64: 1, 128>}, {pipeline_mode = #tpu.pipeline_mode<synchronous>, transform_indices = @transform_3, window_bounds = array<i64: 128, 128>}, {pipeline_mode = #tpu.pipeline_mode<synchronous>, transform_indices = @transform_4, window_bounds = array<i64: 1, 128>}, {pipeline_mode = #tpu.pipeline_mode<synchronous>, transform_indices = @transform_5, window_bounds = array<i64: 128, 128>}, {pipeline_mode = #tpu.pipeline_mode<synchronous>, transform_indices = @transform_6, window_bounds = array<i64: 1, 128>}, {transform_indices = @transform_7, window_bounds = array<i64: 8, 128>}]} {
    %c0 = arith.constant 0 : index
    %c0_0 = arith.constant 0 : index
    %0 = vector.load %arg1[%c0, %c0_0] : memref<8x256xbf16, #tpu.memory_space<vmem>>, vector<8x256xbf16>
    %c0_1 = arith.constant 0 : index
    %c0_2 = arith.constant 0 : index
    %1 = vector.load %arg2[%c0_1, %c0_2] : memref<256x128xbf16, #tpu.memory_space<vmem>>, vector<256x128xbf16>
    %cst = arith.constant dense<0.000000e+00> : vector<8x128xf32>
    %2 = tpu.matmul %0, %1, %cst {dimension_numbers = #tpu.dot_dimension_numbers<[1], [0], [0], [1], [0, 0, 1, 1], [], []>} : vector<8x256xbf16>, vector<256x128xbf16>, vector<8x128xf32> -> vector<8x128xf32>
    %c0_3 = arith.constant 0 : index
    %c0_4 = arith.constant 0 : index
    %3 = vector.load %arg3[%c0_3, %c0_4] : memref<1x128xf32, #tpu.memory_space<vmem>>, vector<1x128xf32>
    %4 = vector.broadcast %3 : vector<1x128xf32> to vector<8x128xf32>
    %5 = arith.addf %2, %4 : vector<8x128xf32>
    %cst_5 = arith.constant 0.000000e+00 : f32
    %6 = vector.broadcast %cst_5 : f32 to vector<8x128xf32>
    %7 = arith.maximumf %5, %6 : vector<8x128xf32>
    %8 = arith.truncf %7 : vector<8x128xf32> to vector<8x128xbf16>
    %c0_6 = arith.constant 0 : index
    %c0_7 = arith.constant 0 : index
    %9 = vector.load %arg4[%c0_6, %c0_7] : memref<128x128xbf16, #tpu.memory_space<vmem>>, vector<128x128xbf16>
    %cst_8 = arith.constant dense<0.000000e+00> : vector<8x128xf32>
    %10 = tpu.matmul %8, %9, %cst_8 {dimension_numbers = #tpu.dot_dimension_numbers<[1], [0], [0], [1], [0, 0, 1, 1], [], []>} : vector<8x128xbf16>, vector<128x128xbf16>, vector<8x128xf32> -> vector<8x128xf32>
    %c0_9 = arith.constant 0 : index
    %c0_10 = arith.constant 0 : index
    %11 = vector.load %arg5[%c0_9, %c0_10] : memref<1x128xf32, #tpu.memory_space<vmem>>, vector<1x128xf32>
    %12 = vector.broadcast %11 : vector<1x128xf32> to vector<8x128xf32>
    %13 = arith.addf %10, %12 : vector<8x128xf32>
    %cst_11 = arith.constant 0.000000e+00 : f32
    %14 = vector.broadcast %cst_11 : f32 to vector<8x128xf32>
    %15 = arith.maximumf %13, %14 : vector<8x128xf32>
    %16 = arith.truncf %15 : vector<8x128xf32> to vector<8x128xbf16>
    %c0_12 = arith.constant 0 : index
    %c0_13 = arith.constant 0 : index
    %17 = vector.load %arg6[%c0_12, %c0_13] : memref<128x128xbf16, #tpu.memory_space<vmem>>, vector<128x128xbf16>
    %cst_14 = arith.constant dense<0.000000e+00> : vector<8x128xf32>
    %18 = tpu.matmul %16, %17, %cst_14 {dimension_numbers = #tpu.dot_dimension_numbers<[1], [0], [0], [1], [0, 0, 1, 1], [], []>} : vector<8x128xbf16>, vector<128x128xbf16>, vector<8x128xf32> -> vector<8x128xf32>
    %c0_15 = arith.constant 0 : index
    %c0_16 = arith.constant 0 : index
    %19 = vector.load %arg7[%c0_15, %c0_16] : memref<1x128xf32, #tpu.memory_space<vmem>>, vector<1x128xf32>
    %20 = vector.broadcast %19 : vector<1x128xf32> to vector<8x128xf32>
    %21 = arith.addf %18, %20 : vector<8x128xf32>
    %22 = tpu.iota {dimensions = array<i32: 1>} : vector<8x128xi32>
    %c4_i32 = arith.constant 4 : i32
    %23 = vector.broadcast %c4_i32 : i32 to vector<8x128xi32>
    %24 = arith.cmpi slt, %22, %23 : vector<8x128xi32>
    %cst_17 = arith.constant 0xFF800000 : f32
    %25 = vector.broadcast %cst_17 : f32 to vector<8x128xf32>
    %26 = arith.select %24, %21, %25 : vector<8x128xi1>, vector<8x128xf32>
    %cst_18 = arith.constant dense<0xFF800000> : vector<8xf32>
    %27 = vector.multi_reduction <maximumf>, %26, %cst_18 [1] : vector<8x128xf32> to vector<8xf32>
    %28 = vector.shape_cast %27 : vector<8xf32> to vector<8x1xf32>
    %29 = vector.broadcast %28 : vector<8x1xf32> to vector<8x128xf32>
    %30 = arith.subf %26, %29 : vector<8x128xf32>
    %31 = math.exp %30 : vector<8x128xf32>
    %cst_19 = arith.constant 0.000000e+00 : f32
    %32 = vector.broadcast %cst_19 : f32 to vector<8x128xf32>
    %33 = arith.select %24, %31, %32 : vector<8x128xi1>, vector<8x128xf32>
    %cst_20 = arith.constant dense<0.000000e+00> : vector<8xf32>
    %34 = vector.multi_reduction <add>, %33, %cst_20 [1] : vector<8x128xf32> to vector<8xf32>
    %35 = vector.shape_cast %34 : vector<8xf32> to vector<8x1xf32>
    %36 = vector.broadcast %35 : vector<8x1xf32> to vector<8x128xf32>
    %37 = arith.divf %33, %36 : vector<8x128xf32>
    %38 = arith.select %24, %37, %21 : vector<8x128xi1>, vector<8x128xf32>
    %c0_21 = arith.constant 0 : index
    %c0_22 = arith.constant 0 : index
    %39 = vector.load %arg8[%c0_21, %c0_22] : memref<8x128xf32, #tpu.memory_space<vmem>>, vector<8x128xf32>
    tpu.vector_store %arg8[%c0_21, %c0_22], %38 {strides = array<i32>} : memref<8x128xf32, #tpu.memory_space<vmem>>, vector<8x128xf32>,
    return
  }
  func.func @transform_0(%arg0: i32) -> (i32, i32) {
    %c0_i32 = arith.constant 0 : i32
    %c0_i32_0 = arith.constant 0 : i32
    return %arg0, %c0_i32 : i32, i32
  }
  func.func @transform_1(%arg0: i32) -> (i32, i32) {
    %c0_i32 = arith.constant 0 : i32
    %c0_i32_0 = arith.constant 0 : i32
    %c0_i32_1 = arith.constant 0 : i32
    return %c0_i32, %c0_i32_0 : i32, i32
  }
  func.func @transform_2(%arg0: i32) -> (i32, i32) {
    %c0_i32 = arith.constant 0 : i32
    %c0_i32_0 = arith.constant 0 : i32
    %c0_i32_1 = arith.constant 0 : i32
    return %c0_i32, %c0_i32_0 : i32, i32
  }
  func.func @transform_3(%arg0: i32) -> (i32, i32) {
    %c0_i32 = arith.constant 0 : i32
    %c0_i32_0 = arith.constant 0 : i32
    %c0_i32_1 = arith.constant 0 : i32
    return %c0_i32, %c0_i32_0 : i32, i32
  }
  func.func @transform_4(%arg0: i32) -> (i32, i32) {
    %c0_i32 = arith.constant 0 : i32
    %c0_i32_0 = arith.constant 0 : i32
    %c0_i32_1 = arith.constant 0 : i32
    return %c0_i32, %c0_i32_0 : i32, i32
  }
  func.func @transform_5(%arg0: i32) -> (i32, i32) {
    %c0_i32 = arith.constant 0 : i32
    %c0_i32_0 = arith.constant 0 : i32
    %c0_i32_1 = arith.constant 0 : i32
    return %c0_i32, %c0_i32_0 : i32, i32
  }
  func.func @transform_6(%arg0: i32) -> (i32, i32) {
    %c0_i32 = arith.constant 0 : i32
    %c0_i32_0 = arith.constant 0 : i32
    %c0_i32_1 = arith.constant 0 : i32
    return %c0_i32, %c0_i32_0 : i32, i32
  }
  func.func @transform_7(%arg0: i32) -> (i32, i32) {
    %c0_i32 = arith.constant 0 : i32
    %c0_i32_0 = arith.constant 0 : i32
    return %arg0, %c0_i32 : i32, i32
  }
}

</mosaic_0001>

<bundles_post_ra>
// kernel: ppo_forward.1
= control target key start
LH: loop header
LB: loop body
LE: loop exit
PB: predicated region body
PF: predicated region fallthrough
CT: control target
= control target key end

     0   :  { %v613_v1 = vmov 0.0   ;;  %vm614_vm0 = vmmov 0   ;;  %v436_v53 = vlaneseq  ;;  %s787_s1 = inlined_call_operand.vmem [shape: bf16[256,128], index: 1, kind: input, shape index: {}]   ;;  %s788_s0 = inlined_call_operand.vmem [shape: bf16[8,256], index: 0, kind: input, shape index: {}]   ;;  %s789_s3 = inlined_call_operand.vmem [shape: bf16[128,128], index: 3, kind: input, shape index: {}]   ;;  %s790_s5 = inlined_call_operand.vmem [shape: bf16[128,128], index: 5, kind: input, shape index: {}]   ;;  %s791_s2 = inlined_call_operand.vmem [shape: f32[1,128], index: 2, kind: input, shape index: {}]   ;;  %s792_s4 = inlined_call_operand.vmem [shape: f32[1,128], index: 4, kind: input, shape index: {}]   ;;  %s793_s6 = inlined_call_operand.vmem [shape: f32[1,128], index: 6, kind: input, shape index: {}]   ;;  %s794_s7 = inlined_call_operand.vmem [shape: f32[8,128], index: 7, kind: output, shape index: {}]  }
   0x1   :  { %v575_v0 = vld [vmem:[%s787_s1 + $0x78] sm:$0xff]   ;;  %533 = vmatprep.subr.bf16.mxu1 %v613_v1  ;;  %v577_v3 = vld [vmem:[%s787_s1 + $0x70] sm:$0xff]   ;;  %v579_v5 = vld [vmem:[%s787_s1 + $0x68] sm:$0xff]   ;;  %549 = vmatprep.mubr.msk.bf16.mxu1 %vm614_vm0, %v613_v1 }
   0x2   :  { %v576_v2 = vld [vmem:[%s787_s1 + $0x38] sm:$0xff]   ;;  %493 = vmatprep.subr.bf16.mxu0 %v575_v0  ;;  %v578_v4 = vld [vmem:[%s787_s1 + $0x30] sm:$0xff]   ;;  %v580_v6 = vld [vmem:[%s787_s1 + $0x28] sm:$0xff]   ;;  %v437_v54 = vand.u32 127, %v436_v53 }
   0x3   :  { %494 = vmatpush3.bf16.msra.mxu0 %v576_v2  ;;  %v581_v7 = vld [vmem:[%s787_s1 + $0x60] sm:$0xff]   ;;  %v583_v9 = vld [vmem:[%s787_s1 + $0x58] sm:$0xff]   ;;  %v585_v11 = vld [vmem:[%s787_s1 + $0x50] sm:$0xff]  }
   0x4   :  { %495 = vmatprep.subr.bf16.mxu0 %v577_v3  ;;  %v582_v8 = vld [vmem:[%s787_s1 + $0x20] sm:$0xff]   ;;  %v584_v10 = vld [vmem:[%s787_s1 + $0x18] sm:$0xff]   ;;  %v586_v15 = vld [vmem:[%s787_s1 + $0x10] sm:$0xff]   ;;  %vm438_vm1 = vcmp.lt.s32.totalorder %v437_v54, 4 }
   0x5   :  { %v27_v12 = vld [vmem:[%s788_s0] sm:$0xff]  ;;  %v593_v14 = vld [vmem:[%s789_s3 + $0x38] sm:$0xff]   ;;  %v587_v16 = vld [vmem:[%s787_s1 + $0x48] sm:$0xff]  }
   0x6   :  { %v458_v13 = vcombine.high %v27_v12, %v27_v12  ;;  %534 = vmatpush3.bf16.msra.mxu1 %v593_v14  ;;  %v594_v17 = vld [vmem:[%s789_s3 + $0x30] sm:$0xff]   ;;  %v588_v18 = vld [vmem:[%s787_s1 + $0x8] sm:$0xff]   ;;  %v589_v19 = vld [vmem:[%s787_s1 + $0x40] sm:$0xff]   ;;  %v457_v23 = vcombine.low %v27_v12, %v27_v12 }
   0x7   :  { %496 = vmatpush3.bf16.msra.mxu0 %v578_v4  ;;  %535 = vmatprep.subr.bf16.mxu1 %v613_v1  ;;  %v595_v20 = vld [vmem:[%s789_s3 + $0x28] sm:$0xff]   ;;  %v590_v21 = vld [vmem:[%s787_s1] sm:$0xff]   ;;  %v597_v24 = vld [vmem:[%s789_s3 + $0x18] sm:$0xff]  }
   0x8   :  { %497 = vmatprep.subr.bf16.mxu0 %v579_v5  ;;  %202 = vmatprep.mubr.bf16.mxu0 %v458_v13  ;;  %v596_v22 = vld [vmem:[%s789_s3 + $0x20] sm:$0xff]   ;;  %v598_v25 = vld [vmem:[%s789_s3 + $0x10] sm:$0xff]   ;;  %v599_v26 = vld [vmem:[%s789_s3 + $0x8] sm:$0xff]  }
   0x9   :  { %v600_v27 = vld [vmem:[%s789_s3] sm:$0xff]   ;;  %v601_v28 = vld [vmem:[%s790_s5 + $0x38] sm:$0xff]   ;;  %v602_v29 = vld [vmem:[%s790_s5 + $0x30] sm:$0xff]  }
   0xa   :  { %536 = vmatpush3.bf16.msra.mxu1 %v594_v17  ;;  %v603_v30 = vld [vmem:[%s790_s5 + $0x28] sm:$0xff]   ;;  %v604_v31 = vld [vmem:[%s790_s5 + $0x20] sm:$0xff]   ;;  %v605_v32 = vld [vmem:[%s790_s5 + $0x18] sm:$0xff]  }
   0xb   :  { %498 = vmatpush3.bf16.msra.mxu0 %v580_v6  ;;  %537 = vmatprep.subr.bf16.mxu1 %v613_v1  ;;  %v606_v33 = vld [vmem:[%s790_s5 + $0x10] sm:$0xff]   ;;  %v456_v35 = vld [vmem:[%s791_s2] ss:$0 sm:$0xff]  ;;  %v607_v43 = vld [vmem:[%s790_s5 + $0x8] sm:$0xff]  }
   0xc   :  { %499 = vmatprep.subr.bf16.mxu0 %v581_v7  ;;  %v608_v44 = vld [vmem:[%s790_s5] sm:$0xff]  }
   0xd   :  { %v475_v45 = vld [vmem:[%s792_s4] ss:$0 sm:$0xff] }
   0xe   :  { %538 = vmatpush3.bf16.msra.mxu1 %v595_v20  ;;  %v484_v55 = vld [vmem:[%s793_s6] ss:$0 sm:$0xff] }
   0xf   :  { %500 = vmatpush3.bf16.msra.mxu0 %v582_v8  ;;  %539 = vmatprep.subr.bf16.mxu1 %v613_v1 }
  0x10   :  { %501 = vmatprep.subr.bf16.mxu0 %v583_v9 }
  0x12   :  { %540 = vmatpush3.bf16.msra.mxu1 %v596_v22 }
  0x13   :  { %502 = vmatpush3.bf16.msra.mxu0 %v584_v10  ;;  %541 = vmatprep.subr.bf16.mxu1 %v613_v1 }
  0x14   :  { %503 = vmatprep.subr.bf16.mxu0 %v585_v11 }
  0x16   :  { %542 = vmatpush3.bf16.msra.mxu1 %v597_v24 }
  0x17   :  { %504 = vmatpush3.bf16.msra.mxu0 %v586_v15  ;;  %543 = vmatprep.subr.bf16.mxu1 %v613_v1 }
  0x18   :  { %505 = vmatprep.subr.bf16.mxu0 %v587_v16 }
  0x1a   :  { %544 = vmatpush3.bf16.msra.mxu1 %v598_v25 }
  0x1b   :  { %506 = vmatpush3.bf16.msra.mxu0 %v588_v18  ;;  %545 = vmatprep.subr.bf16.mxu1 %v613_v1 }
  0x1c   :  { %507 = vmatprep.subr.bf16.mxu0 %v589_v19 }
  0x1e   :  { %546 = vmatpush3.bf16.msra.mxu1 %v599_v26 }
  0x1f   :  { %508 = vmatpush3.bf16.msra.mxu0 %v590_v21  ;;  %547 = vmatprep.subr.bf16.mxu1 %v613_v1 }
  0x20   :  { %553 = vmatprep.subr.bf16.mxu0 %v613_v1 }
  0x22   :  { %203 = vmatmul.mubr.bf16.vlgmr.msra.gmra.mxu0 %v457_v23  ;;  %548 = vmatpush3.bf16.msra.mxu1 %v600_v27 }
  0x23   :  { %569 = vmatprep.mubr.msk.bf16.mxu0 %vm614_vm0, %v613_v1  ;;  %554 = vmatpush3.bf16.msra.mxu0 %v601_v28 }
  0x24   :  { %555 = vmatprep.subr.bf16.mxu0 %v613_v1 }
  0x27   :  { %556 = vmatpush3.bf16.msra.mxu0 %v602_v29 }
  0x28   :  { %557 = vmatprep.subr.bf16.mxu0 %v613_v1 }
  0x2b   :  { %558 = vmatpush3.bf16.msra.mxu0 %v603_v30 }
  0x2c   :  { %559 = vmatprep.subr.bf16.mxu0 %v613_v1 }
  0x2f   :  { %560 = vmatpush3.bf16.msra.mxu0 %v604_v31 }
  0x30   :  { %561 = vmatprep.subr.bf16.mxu0 %v613_v1 }
  0x33   :  { %562 = vmatpush3.bf16.msra.mxu0 %v605_v32 }
  0x34   :  { %563 = vmatprep.subr.bf16.mxu0 %v613_v1 }
  0x37   :  { %564 = vmatpush3.bf16.msra.mxu0 %v606_v33 }
  0x38   :  { %565 = vmatprep.subr.bf16.mxu0 %v613_v1 }
  0x3b   :  { %566 = vmatpush3.bf16.msra.mxu0 %v607_v43 }
  0x3c   :  { %567 = vmatprep.subr.bf16.mxu0 %v613_v1 }
  0x3f   :  { %568 = vmatpush3.bf16.msra.mxu0 %v608_v44 }
  0xe2   :  { %v509_v34 = vpop.f32.mrf.mxu0 }
  0xe4   :  { %v510_v36 = vpop.f32.mrf.mxu0 }
  0xe5   :  { %v511_v37 = vadd.f32 %v510_v36, %v509_v34 }
  0xe6   :  { %v512_v38 = vpop.f32.mrf.mxu0 }
  0xe7   :  { %v205_v39 = vadd.f32 %v511_v37, %v456_v35 }
  0xe8   :  { %v513_v40 = vpop.f32.mrf.mxu0 }
  0xe9   :  { %v210_v41 = vmax.f32 %v205_v39, 0.0 }
  0xeb   :  { %v211_v42 = vpack.c.bf16 %v210_v41, %v210_v41 }
  0xed   :  { %550 = vmatmul.mubr.bf16.vlgmr.msra.gmra.mxu1 %v211_v42 }
 0x1ad   :  { %v317_v46 = vpop.f32.mrf.mxu1 }
 0x1ae   :  { %v318_v47 = vadd.f32 %v475_v45, %v317_v46 }
 0x1af   :  { %v551_v48 = vpop.f32.mrf.mxu1 }
 0x1b0   :  { %v323_v49 = vmax.f32 %v318_v47, 0.0 }
 0x1b1   :  { %v320_v50 = vpop.f32.mrf.mxu1 }
 0x1b2   :  { %v324_v51 = vpack.c.bf16 %v323_v49, %v323_v49 }
 0x1b3   :  { %v552_v52 = vpop.f32.mrf.mxu1 }
 0x1b4   :  { %570 = vmatmul.mubr.bf16.vlgmr.msra.gmra.mxu0 %v324_v51 }
 0x274   :  { %v430_v56 = vpop.f32.mrf.mxu0 }
 0x275   :  { %v431_v57 = vadd.f32 %v484_v55, %v430_v56 }
 0x276   :  { %v571_v58 = vpop.f32.mrf.mxu0 }
 0x277   :  { %v439_v59 = vsel %vm438_vm1, %v431_v57, -inf }
 0x278   :  { %440 = vmax.xlane.f32.xlu0 %v439_v59  ;;  %v433_v60 = vpop.f32.mrf.mxu0 }
 0x27a   :  { %v572_v61 = vpop.f32.mrf.mxu0 }
 0x301   :  { %v441_v62 = vpop.xlane.xlu0 %440 }
 0x302   :  { %v442_v63 = vsub.f32 %v439_v59, %v441_v62 }
 0x304   :  { %v443_v0 = vmul.f32 1.442695, %v442_v63 }
 0x306   :  { %609 = vpow2.f32 %v443_v0 }
 0x313   :  { %v610_v1 = vpop.eup %609 }
 0x314   :  { %v445_v2 = vsel %vm438_vm1, %v610_v1, 0.0 }
 0x315   :  { %446 = vadd.xlane.f32.xlu0 %v445_v2 }
 0x39e   :  { %v447_v3 = vpop.xlane.xlu0 %446 }
 0x39f   :  { %611 = vrcp.f32 %v447_v3 }
 0x3ac   :  { %v612_v4 = vpop.eup %611 }
 0x3ad   :  { %v449_v5 = vmul.f32 %v612_v4, %v445_v2 }
 0x3af   :  { %v450_v6 = vsel %vm438_vm1, %v449_v5, %v431_v57 }
 0x3b0   :  { %451 = vst [vmem:[%s794_s7] sm:$0xff] %v450_v6 }

</bundles_post_ra>
